<compile_context>
chip_gen: v5e
topology: v5e:2x2
jax: 0.10.0
libtpu: 0.0.40
codegen_flags: <defaults>
</compile_context>

<pallas_src>
from functools import partial

import jax
import jax.numpy as jnp
from jax.experimental import pallas as pl
from jax.experimental.pallas import tpu as pltpu


# ----------------------------- tiled matmul (MXU) -----------------------------

def _matmul_kernel(x_ref, w_ref, b_ref, o_ref, acc_ref, *, nk):
    @pl.when(pl.program_id(2) == 0)
    def _init():
        acc_ref[...] = jnp.zeros_like(acc_ref)

    acc_ref[...] += jnp.dot(x_ref[...], w_ref[...],
                            preferred_element_type=jnp.float32)

    @pl.when(pl.program_id(2) == nk - 1)
    def _finalize():
        o_ref[...] = (acc_ref[...] + b_ref[...].astype(jnp.float32)).astype(o_ref.dtype)


def _tile_dim(dim, target):
    """Full dim if it fits in one tile, else (target, dim padded to a multiple)."""
    if dim <= target:
        return dim, dim
    return target, pl.cdiv(dim, target) * target


def matmul(x, w, b=None, *, tm=256, tn=256, tk=256):
    """(M,K)@(K,N)+bias with K-accumulation in a f32 VMEM scratch.

    Tiles default to 256 (fills the 2x256x256 MXU on v6e/v7x; multiples of 128
    are enough on v5e).  Small dims fall back to a single full-dim block.
    """
    M, K = x.shape
    K2, N = w.shape
    assert K == K2
    tm, Mp = _tile_dim(M, tm)
    tn, Np = _tile_dim(N, tn)
    tk, Kp = _tile_dim(K, tk)
    if (Mp, Kp) != (M, K):
        x = jnp.pad(x, ((0, Mp - M), (0, Kp - K)))
    if (Kp, Np) != (K, N):
        w = jnp.pad(w, ((0, Kp - K), (0, Np - N)))
    if b is None:
        bb = jnp.zeros((1, Np), x.dtype)
    else:
        bb = jnp.pad(b.reshape(1, N).astype(x.dtype), ((0, 0), (0, Np - N)))
    grid = (Mp // tm, Np // tn, Kp // tk)
    out = pl.pallas_call(
        partial(_matmul_kernel, nk=grid[2]),
        grid=grid,
        in_specs=[pl.BlockSpec((tm, tk), lambda i, j, k: (i, k)),
                  pl.BlockSpec((tk, tn), lambda i, j, k: (k, j)),
                  pl.BlockSpec((1, tn), lambda i, j, k: (0, j))],
        out_specs=pl.BlockSpec((tm, tn), lambda i, j, k: (i, j)),
        out_shape=jax.ShapeDtypeStruct((Mp, Np), x.dtype),
        scratch_shapes=[pltpu.VMEM((tm, tn), jnp.float32)],
        compiler_params=pltpu.CompilerParams(
            dimension_semantics=("parallel", "parallel", "arbitrary")),
    )(x, w, bb)
    if (Mp, Np) != (M, N):
        out = out[:M, :N]
    return out


# -------------------- AdaGroupNorm + GELU (lane-dense, fused) -------------------

def _ada_gn_kernel(x_ref, agg_ref, scale_ref, shift_ref, o_ref, *, eps, inv_hw,
                   apply_gelu):
    # x block: (1, HW, C)  -- channels stay on lanes; group statistics computed
    # with a (1,C)@(C,C) aggregation matmul (agg[i,j] = 1/Cg iff same group).
    x = x_ref[0].astype(jnp.float32)                        # (HW, C)
    agg = agg_ref[...]
    s = jnp.sum(x, axis=0, keepdims=True)                   # (1, C)
    mean = jnp.dot(s, agg, preferred_element_type=jnp.float32) * inv_hw
    d = x - mean
    sd = jnp.sum(d * d, axis=0, keepdims=True)              # (1, C)
    var = jnp.dot(sd, agg, preferred_element_type=jnp.float32) * inv_hw
    y = d * jax.lax.rsqrt(var + eps)
    y = y * (1.0 + scale_ref[...].astype(jnp.float32)) + shift_ref[...].astype(jnp.float32)
    if apply_gelu:
        y = jax.nn.gelu(y, approximate=False)               # nn.GELU() (erf)
    o_ref[...] = y[None].astype(o_ref.dtype)


def ada_group_norm_gelu(x, scale, shift, agg, eps, apply_gelu=True):
    """AdaGroupNorm (F.group_norm w/o affine, then x*(1+scale)+shift) + GELU.

    x: (B,H,W,C) NHWC; scale/shift: (B,C); agg: (C,C) group-average matrix.
    """
    B, H, W, C = x.shape
    HW = H * W
    xr = x.reshape(B, HW, C)                                # contiguous -> free
    # TODO(synk): at production HW (e.g. 64x64x1280) tile HW with a two-pass
    # stats accumulation instead of a single (1, HW, C) block.
    out = pl.pallas_call(
        partial(_ada_gn_kernel, eps=eps, inv_hw=1.0 / HW, apply_gelu=apply_gelu),
        grid=(B,),
        in_specs=[pl.BlockSpec((1, HW, C), lambda i: (i, 0, 0)),
                  pl.BlockSpec((C, C), lambda i: (0, 0)),
                  pl.BlockSpec((1, C), lambda i: (i, 0)),
                  pl.BlockSpec((1, C), lambda i: (i, 0))],
        out_specs=pl.BlockSpec((1, HW, C), lambda i: (i, 0, 0)),
        out_shape=jax.ShapeDtypeStruct((B, HW, C), x.dtype),
        compiler_params=pltpu.CompilerParams(dimension_semantics=("parallel",)),
    )(xr, agg, scale, shift)
    return out.reshape(B, H, W, C)


# --------------- 3x3 conv (streamed 9-tap matmul, fused epilogue) ---------------

def _conv3x3_kernel(x_ref, w_ref, b_ref, *rest, H, W, has_res, has_proj):
    if has_proj:
        res_ref, rw_ref, o_ref = rest
    elif has_res:
        res_ref, o_ref = rest
        rw_ref = None
    else:
        (o_ref,) = rest

    cin = x_ref.shape[-1]
    tco = o_ref.shape[-1]
    x = x_ref[0]                                            # (H+2, W+2, Cin)
    acc = jnp.zeros((H * W, tco), jnp.float32)
    for dh in range(3):
        for dw in range(3):
            patch = x[dh:dh + H, dw:dw + W, :].reshape(H * W, cin)
            acc = acc + jnp.dot(patch, w_ref[dh, dw],
                                preferred_element_type=jnp.float32)
    acc = acc + b_ref[...].astype(jnp.float32)
    if has_res:                                             # fused shortcut + residual add
        r = res_ref[0]                                      # (HW, Cres)
        if has_proj:
            acc = acc + jnp.dot(r, rw_ref[...], preferred_element_type=jnp.float32)
        else:
            acc = acc + r.astype(jnp.float32)
    o_ref[...] = acc[None].astype(o_ref.dtype)


def _channel_tile(c, target=256):
    if c <= target:
        return c
    for t in (target, 128):
        if c % t == 0:
            return t
    return c


def conv2d_3x3(x, w, b, residual=None, residual_w=None):
    """x: NHWC, w: (3,3,Cin,Cout), b: (Cout,).  stride=1, zero padding=1.

    The 9 taps are accumulated in VMEM (no im2col in HBM).  If `residual` is
    given, the residual add (optionally through a bias-free 1x1 `residual_w`
    shortcut conv) is fused into the epilogue.
    """
    B, H, W, Cin = x.shape
    Cout = w.shape[-1]
    HW = H * W
    xp = jnp.pad(x, ((0, 0), (1, 1), (1, 1), (0, 0)))       # zero pad (host glue)
    tco = _channel_tile(Cout)
    nco = Cout // tco
    # TODO(synk): for production H*W the spatial axis should also be tiled
    # (row blocks with a 2-row halo) to bound VMEM; not needed at these sizes.
    in_specs = [pl.BlockSpec((1, H + 2, W + 2, Cin), lambda bi, ci: (bi, 0, 0, 0)),
                pl.BlockSpec((3, 3, Cin, tco), lambda bi, ci: (0, 0, 0, ci)),
                pl.BlockSpec((1, tco), lambda bi, ci: (0, ci))]
    args = [xp, w, b.reshape(1, Cout)]
    has_res = residual is not None
    has_proj = residual_w is not None
    if has_res:
        Cres = residual.shape[-1]
        in_specs.append(pl.BlockSpec((1, HW, Cres), lambda bi, ci: (bi, 0, 0)))
        args.append(residual.reshape(B, HW, Cres))
        if has_proj:
            in_specs.append(pl.BlockSpec((Cres, tco), lambda bi, ci: (0, ci)))
            args.append(residual_w)
    out = pl.pallas_call(
        partial(_conv3x3_kernel, H=H, W=W, has_res=has_res, has_proj=has_proj),
        grid=(B, nco),
        in_specs=in_specs,
        out_specs=pl.BlockSpec((1, HW, tco), lambda bi, ci: (bi, 0, ci)),
        out_shape=jax.ShapeDtypeStruct((B, HW, Cout), x.dtype),
        compiler_params=pltpu.CompilerParams(
            dimension_semantics=("parallel", "parallel")),
    )(*args)
    return out.reshape(B, H, W, Cout)


# ------------------- KUpsample2D (separable transposed conv) --------------------

def _kupsample_kernel(x_ref, o_ref, *, H, W):
    # x block: (1, H+2, W+2, C) -- reflect-padded input.
    # Transposed conv (stride 2, pad 3) with the fixed separable kernel
    # k1d = [1/4, 3/4, 3/4, 1/4]:
    #   even out rows  = 1/4 * xp[m]   + 3/4 * xp[m+1]
    #   odd  out rows  = 3/4 * xp[m+1] + 1/4 * xp[m+2]
    # and identically along columns.
    x = x_ref[0].astype(jnp.float32)
    C = x.shape[-1]
    a, b = 0.25, 0.75
    re = a * x[0:H] + b * x[1:H + 1]                        # (H, W+2, C)
    ro = b * x[1:H + 1] + a * x[2:H + 2]

    def col_mix(r):
        ce = a * r[:, 0:W] + b * r[:, 1:W + 1]              # (H, W, C)
        co = b * r[:, 1:W + 1] + a * r[:, 2:W + 2]
        return jnp.concatenate([ce, co], axis=-1)           # lanes: [even | odd] cols

    rows = jnp.stack([col_mix(re), col_mix(ro)], axis=1)    # (H, 2, W, 2C)
    o_ref[...] = rows.reshape(1, 2 * H, W, 2 * C).astype(o_ref.dtype)


def k_upsample_2d(x):
    """KUpsample2D: reflect pad 1 + depthwise conv_transpose2d(stride=2, pad=3)."""
    B, H, W, C = x.shape
    xp = jnp.pad(x, ((0, 0), (1, 1), (1, 1), (0, 0)), mode="reflect")
    out = pl.pallas_call(
        partial(_kupsample_kernel, H=H, W=W),
        grid=(B,),
        in_specs=[pl.BlockSpec((1, H + 2, W + 2, C), lambda bi: (bi, 0, 0, 0))],
        out_specs=pl.BlockSpec((1, 2 * H, W, 2 * C), lambda bi: (bi, 0, 0, 0)),
        out_shape=jax.ShapeDtypeStruct((B, 2 * H, W, 2 * C), x.dtype),
        compiler_params=pltpu.CompilerParams(dimension_semantics=("parallel",)),
    )(xp)
    # (B, 2H, W, 2C) -> (B, 2H, 2W, C) is a contiguous (free) reshape that
    # realizes the even/odd column interleave produced by the lane concat.
    return out.reshape(B, 2 * H, 2 * W, C)


# ------------------------- ResnetBlock2D (ada_group) ----------------------------

def resnet_block(x, temb, p, eps):
    """ResnetBlock2D with time_embedding_norm='ada_group', non_linearity='gelu',
    conv_shortcut_bias=False, output_scale_factor=1.0, dropout=0 (eval)."""
    B, H, W, cin = x.shape
    cout = p["conv1_w"].shape[-1]

    # norm1 = AdaGroupNorm(temb) fused with the following GELU.
    emb1 = matmul(temb, p["norm1_lin_w"], p["norm1_lin_b"])          # (B, 2*cin)
    h = ada_group_norm_gelu(x, emb1[:, :cin], emb1[:, cin:], p["agg1"], eps)
    h = conv2d_3x3(h, p["conv1_w"], p["conv1_b"])
    # time_emb_proj is None for 'ada_group' -> no post-conv1 temb add.

    emb2 = matmul(temb, p["norm2_lin_w"], p["norm2_lin_b"])          # (B, 2*cout)
    h = ada_group_norm_gelu(h, emb2[:, :cout], emb2[:, cout:], p["agg2"], eps)
    # TODO(synk): dropout (p=0.0 / eval mode) is identity -> omitted.

    # conv2 with the shortcut (1x1 conv without bias, or identity) and the
    # residual add fused into its epilogue.
    h = conv2d_3x3(h, p["conv2_w"], p["conv2_b"],
                   residual=x, residual_w=p.get("short_w"))
    return h                                                          # scale factor 1.0


# -------------------------------- KUpBlock2D ------------------------------------

def k_up_block_2d(hidden_states, res_hidden_states_tuple, temb, params, *, eps=1e-5):
    """hidden_states: (B, C, H, W) NCHW (PyTorch layout at the boundary)."""
    res = res_hidden_states_tuple[-1]
    h = jnp.transpose(hidden_states, (0, 2, 3, 1))                    # NCHW -> NHWC
    if res is not None:
        h = jnp.concatenate([h, jnp.transpose(res, (0, 2, 3, 1))], axis=-1)
    for p in params["resnets"]:
        h = resnet_block(h, temb, p, eps)
    h = k_upsample_2d(h)                                              # add_upsample=True
    # TODO(synk): the boundary NCHW<->NHWC transposes could be folded into the
    # first / last kernels' BlockSpecs to save two HBM passes.
    return jnp.transpose(h, (0, 3, 1, 2))                             # NHWC -> NCHW


# ------------------------------ parameter init ----------------------------------

def _group_scale_matrix(channels, groups):
    """agg[i,j] = 1/Cg if channel i and j share a group (F.group_norm grouping)."""
    cg = channels // groups
    gid = jnp.arange(channels) // cg
    return (gid[:, None] == gid[None, :]).astype(jnp.float32) / float(cg)


def init_params(key, *, in_channels, out_channels, temb_channels,
                num_layers, resnet_group_size):
    keys = iter(jax.random.split(key, 128))

    def nrm(shape, scale=0.05):
        return scale * jax.random.normal(next(keys), shape, dtype=jnp.float32)

    k_in_channels = 2 * out_channels
    k_out_channels = in_channels
    n = num_layers - 1
    resnets = []
    for i in range(n):
        cin = k_in_channels if i == 0 else out_channels
        cout = k_out_channels if i == n - 1 else out_channels
        groups = cin // resnet_group_size
        groups_out = out_channels // resnet_group_size
        p = dict(
            norm1_lin_w=nrm((temb_channels, 2 * cin)),
            norm1_lin_b=nrm((2 * cin,)),
            agg1=_group_scale_matrix(cin, groups),
            conv1_w=nrm((3, 3, cin, cout)),
            conv1_b=nrm((cout,)),
            norm2_lin_w=nrm((temb_channels, 2 * cout)),
            norm2_lin_b=nrm((2 * cout,)),
            agg2=_group_scale_matrix(cout, groups_out),
            conv2_w=nrm((3, 3, cout, cout)),
            conv2_b=nrm((cout,)),
        )
        if cin != cout:                         # use_in_shortcut, conv_shortcut_bias=False
            p["short_w"] = nrm((cin, cout))
        resnets.append(p)
    return dict(resnets=resnets)


# ----------------------------------- main ---------------------------------------

if __name__ == "__main__":
    B, H, W = 2, 16, 16
    in_channels = 16          # KUpBlock2D in_channels (= output channels k_out)
    out_channels = 32
    temb_channels = 32
    num_layers = 3            # diffusers builds num_layers - 1 = 2 resnets
    resnet_group_size = 8
    eps = 1e-5                # resnet_eps default

    key = jax.random.PRNGKey(0)
    k1, k2, k3, kp = jax.random.split(key, 4)
    hidden_states = jax.random.normal(k1, (B, out_channels, H, W), jnp.float32)
    res_hidden_states_tuple = (
        jax.random.normal(k2, (B, out_channels, H, W), jnp.float32),)
    temb = jax.random.normal(k3, (B, temb_channels), jnp.float32)

    params = init_params(kp, in_channels=in_channels, out_channels=out_channels,
                         temb_channels=temb_channels, num_layers=num_layers,
                         resnet_group_size=resnet_group_size)

    out = k_up_block_2d(hidden_states, res_hidden_states_tuple, temb, params, eps=eps)
    out = jax.block_until_ready(out)
    assert out.shape == (B, in_channels, 2 * H, 2 * W), out.shape
    assert bool(jnp.all(jnp.isfinite(out)))
    print("KERNEL_OK")
</pallas_src>

<mosaic_0001>
module attributes {stable_mosaic.version = 11 : i64} {
  func.func @_matmul_kernel(%arg0: i32, %arg1: i32, %arg2: i32, %arg3: memref<2x32xf32, #tpu.memory_space<vmem>>, %arg4: memref<32x128xf32, #tpu.memory_space<vmem>>, %arg5: memref<1x128xf32, #tpu.memory_space<vmem>>, %arg6: memref<2x128xf32, #tpu.memory_space<vmem>>, %arg7: memref<2x128xf32, #tpu.memory_space<vmem>>) attributes {dimension_semantics = [#tpu.dimension_semantics<parallel>, #tpu.dimension_semantics<parallel>, #tpu.dimension_semantics<arbitrary>], iteration_bounds = array<i64: 1, 1, 1>, scalar_prefetch = 0 : i64, scratch_operands = 1 : i64, tpu.core_type = #tpu.core_type<tc>, window_params = [{transform_indices = @transform_0, window_bounds = array<i64: 2, 32>}, {transform_indices = @transform_1, window_bounds = array<i64: 32, 128>}, {transform_indices = @transform_2, window_bounds = array<i64: 1, 128>}, {transform_indices = @transform_3, window_bounds = array<i64: 2, 128>}]} {
    %c0_i32 = arith.constant 0 : i32
    %0 = arith.cmpi eq, %arg2, %c0_i32 : i32
    %1 = arith.extui %0 : i1 to i32
    %c0_i32_0 = arith.constant 0 : i32
    %2 = arith.cmpi ne, %1, %c0_i32_0 : i32
    scf.if %2 {
      %cst_10 = arith.constant 0.000000e+00 : f32
      %12 = vector.broadcast %cst_10 : f32 to vector<2x128xf32>
      %c0_11 = arith.constant 0 : index
      %c0_12 = arith.constant 0 : index
      %13 = vector.load %arg7[%c0_11, %c0_12] : memref<2x128xf32, #tpu.memory_space<vmem>>, vector<2x128xf32>
      tpu.vector_store %arg7[%c0_11, %c0_12], %12 {strides = array<i32>} : memref<2x128xf32, #tpu.memory_space<vmem>>, vector<2x128xf32>,
    } else {
    }
    %c0 = arith.constant 0 : index
    %c0_1 = arith.constant 0 : index
    %3 = vector.load %arg7[%c0, %c0_1] : memref<2x128xf32, #tpu.memory_space<vmem>>, vector<2x128xf32>
    %c0_2 = arith.constant 0 : index
    %c0_3 = arith.constant 0 : index
    %4 = vector.load %arg3[%c0_2, %c0_3] : memref<2x32xf32, #tpu.memory_space<vmem>>, vector<2x32xf32>
    %c0_4 = arith.constant 0 : index
    %c0_5 = arith.constant 0 : index
    %5 = vector.load %arg4[%c0_4, %c0_5] : memref<32x128xf32, #tpu.memory_space<vmem>>, vector<32x128xf32>
    %cst = arith.constant dense<0.000000e+00> : vector<2x128xf32>
    %6 = tpu.matmul %4, %5, %cst {dimension_numbers = #tpu.dot_dimension_numbers<[1], [0], [0], [1], [0, 0, 1, 1], [], []>} : vector<2x32xf32>, vector<32x128xf32>, vector<2x128xf32> -> vector<2x128xf32>
    %7 = arith.addf %3, %6 : vector<2x128xf32>
    %c0_6 = arith.constant 0 : index
    %c0_7 = arith.constant 0 : index
    %8 = vector.load %arg7[%c0_6, %c0_7] : memref<2x128xf32, #tpu.memory_space<vmem>>, vector<2x128xf32>
    tpu.vector_store %arg7[%c0_6, %c0_7], %7 {strides = array<i32>} : memref<2x128xf32, #tpu.memory_space<vmem>>, vector<2x128xf32>,
    %c0_i32_8 = arith.constant 0 : i32
    %9 = arith.cmpi eq, %arg2, %c0_i32_8 : i32
    %10 = arith.extui %9 : i1 to i32
    %c0_i32_9 = arith.constant 0 : i32
    %11 = arith.cmpi ne, %10, %c0_i32_9 : i32
    scf.if %11 {
      %c0_10 = arith.constant 0 : index
      %c0_11 = arith.constant 0 : index
      %12 = vector.load %arg7[%c0_10, %c0_11] : memref<2x128xf32, #tpu.memory_space<vmem>>, vector<2x128xf32>
      %c0_12 = arith.constant 0 : index
      %c0_13 = arith.constant 0 : index
      %13 = vector.load %arg5[%c0_12, %c0_13] : memref<1x128xf32, #tpu.memory_space<vmem>>, vector<1x128xf32>
      %14 = vector.broadcast %13 : vector<1x128xf32> to vector<2x128xf32>
      %15 = arith.addf %12, %14 : vector<2x128xf32>
      %c0_14 = arith.constant 0 : index
      %c0_15 = arith.constant 0 : index
      %16 = vector.load %arg6[%c0_14, %c0_15] : memref<2x128xf32, #tpu.memory_space<vmem>>, vector<2x128xf32>
      tpu.vector_store %arg6[%c0_14, %c0_15], %15 {strides = array<i32>} : memref<2x128xf32, #tpu.memory_space<vmem>>, vector<2x128xf32>,
    } else {
    }
    return
  }
  func.func @transform_0(%arg0: i32, %arg1: i32, %arg2: i32) -> (i32, i32) {
    %c0_i32 = arith.constant 0 : i32
    return %arg0, %arg2 : i32, i32
  }
  func.func @transform_1(%arg0: i32, %arg1: i32, %arg2: i32) -> (i32, i32) {
    %c0_i32 = arith.constant 0 : i32
    return %arg2, %arg1 : i32, i32
  }
  func.func @transform_2(%arg0: i32, %arg1: i32, %arg2: i32) -> (i32, i32) {
    %c0_i32 = arith.constant 0 : i32
    %c0_i32_0 = arith.constant 0 : i32
    return %c0_i32, %arg1 : i32, i32
  }
  func.func @transform_3(%arg0: i32, %arg1: i32, %arg2: i32) -> (i32, i32) {
    %c0_i32 = arith.constant 0 : i32
    return %arg0, %arg1 : i32, i32
  }
}

</mosaic_0001>

<bundles_post_ra>
// kernel: tpu_custom_call.1
= control target key start
LH: loop header
LB: loop body
LE: loop exit
PB: predicated region body
PF: predicated region fallthrough
CT: control target
= control target key end

     0   :  { %8 = vsyncpa [#allocation4], 0  ;;  %s234_s0 = inlined_call_operand.hbm [shape: f32[2,32], index: 0, kind: input, shape index: {}]   ;;  %s235_s1 = inlined_call_operand.hbm [shape: f32[32,128], index: 1, kind: input, shape index: {}]   ;;  %s236_s2 = inlined_call_operand.vmem [shape: f32[1,128], index: 2, kind: input, shape index: {}]   ;;  %s237_s3 = inlined_call_operand.hbm [shape: f32[2,128], index: 3, kind: output, shape index: {}]  }
   0x1   :  { %9 = vsyncpa [#allocation7], 0 }
   0x2   :  { %10 = vsyncpa [#allocation5], 0  ;;  %s16_s14 = sshll.u32 %s234_s0, 4  ;;  %s196_s15 = smov [#allocation3]   ;;  %s17_s14 = int_to_ptr.hbm [resolvable:$true] %s16_s14 }
   0x3   :  { %s18_s16 = sshll.u32 %s196_s15, 4  ;;  %s26_s19 = sshll.u32 %s235_s1, 4  ;;  %s19_s16 = int_to_ptr.vmem [resolvable:$true] %s18_s16  ;;  %s27_s19 = int_to_ptr.hbm [resolvable:$true] %s26_s19 }
   0x4   :  { %21 = dma.hbm_to_vmem [thread:$0]  %s17_s14, 32, %s19_s16, [#allocation4]  }
   0x5   :  { %s197_s20 = smov [#allocation6]   ;;  %s198_s22 = smov 128  }
   0x6   :  { %s28_s21 = sshll.u32 %s197_s20, 4  ;;  %s199_s23 = smov 8   ;;  %s29_s21 = int_to_ptr.vmem [resolvable:$true] %s28_s21 }
   0x7   :  { %34 = dma.hbm_to_vmem [thread:$0]  %s27_s19, 512, %s29_s21, [#allocation7], %s198_s22, %s198_s22, %s199_s23  }
   0x8   :  { %190 = dma.done.wait [#allocation4], 32  }
   0x9   :  { %191 = vsyncadd [#allocation4], 4294967264 }
   0xa   :  { %192 = dma.done.wait [#allocation7], 512  }
   0xb   :  { %193 = vsyncadd [#allocation7], 4294966784  ;;  %v200_v0 = vmov 0.0   ;;  %v55_v1 = vld [vmem:[#allocation6 + $0x18] sm:$0xff]  ;;  %v54_v2 = vld [vmem:[#allocation6 + $0x10] sm:$0xff]  ;;  %vm56_vm0 = vcmask 261120  }
   0xc   :  { %49 = vst [vmem:[#allocation2] sm:$0x3] %v200_v0  ;;  %72 = vmatpush.msra.mxu0 %v55_v1  ;;  %v53_v3 = vld [vmem:[#allocation6 + $0x8] sm:$0xff]  ;;  %v52_v4 = vld [vmem:[#allocation6] sm:$0xff]  ;;  %v51_v5 = vld [vmem:[#allocation3] sm:$0x3] }
   0xd   :  { %v117_v9 = vld [vmem:[%s236_s2] ss:$0 sm:$0xff]  ;;  %s201_s24 = smov [#allocation8]   ;;  %s99_s28 = sshll.u32 %s237_s3, 4  ;;  %s100_s28 = int_to_ptr.hbm [resolvable:$true] %s99_s28 }
   0xe   :  { %73 = vmatpush.msra.mxu0 %v54_v2  ;;  %s97_s25 = sshll.u32 %s201_s24, 4  ;;  %s98_s25 = int_to_ptr.vmem [resolvable:$true] %s97_s25 }
  0x10   :  { %74 = vmatpush.msra.mxu0 %v53_v3 }
  0x12   :  { %75 = vmatpush.msra.mxu0 %v52_v4 }
  0x13   :  { %110 = vmatmul.msk.f32.vlgmr.msra.gmra.mxu0 %vm56_vm0, %v51_v5  ;;  %v50_v6 = vld [vmem:[#allocation2] sm:$0x3] }
  0x90   :  { %v77_v7 = vpop.f32.mrf.mxu0 }
  0x91   :  { %v80_v8 = vadd.f32 %v77_v7, %v50_v6 }
  0x93   :  { %81 = vst [vmem:[#allocation2] sm:$0x3] %v80_v8 }
  0x9a   :  { %v85_v10 = vld [vmem:[#allocation2] sm:$0x3] }
  0x9b   :  { %v90_v11 = vadd.f32 %v117_v9, %v85_v10 }
  0x9d   :  { %91 = vst [vmem:[#allocation8] sm:$0x3] %v90_v11 }
  0x9e   :  { %102 = dma.vmem_to_hbm [thread:$0]  %s98_s25, 32, %s100_s28, [#allocation5]  }
  0x9f   :  { %194 = dma.done.wait [#allocation5], 32  }
  0xa0   :  { %195 = vsyncadd [#allocation5], 4294967264 }
  0xa1   :  { %107 = vsyncpa [#allocation4], 1 }
  0xa2   :  { %108 = vsyncpa [#allocation7], 1 }
  0xa3   :  { %109 = vsyncpa [#allocation5], 1 }

</bundles_post_ra>
